<compile_context>
chip_gen: v5e
topology: v5e:2x2
jax: 0.10.0
libtpu: 0.0.40
codegen_flags: <defaults>
</compile_context>

<pallas_src>
import functools

import jax
import jax.numpy as jnp
from jax.experimental import pallas as pl
from jax.experimental.pallas import tpu as pltpu

LANE = 128       # TPU lane width (last dim)
SUBLANE = 8      # f32 sublane width
ROW_ALIGN = 16   # bf16 sublane pack -> keep row tiles multiples of 16


def _round_up(x, m):
    return ((x + m - 1) // m) * m


def _vmem_budget_bytes():
    """Chip-aware VMEM budget: capacity minus 16 MiB headroom for compiler
    scratch (v5e/v6e: ~112 MiB, v7x: ~48 MiB)."""
    try:
        cap = int(pltpu.get_tpu_info().vmem_capacity_bytes)
    except Exception:
        cap = 64 * 1024 * 1024          # conservative fallback (v7x-sized)
    return max(cap - 16 * 1024 * 1024, 32 * 1024 * 1024)


def _choose_row_tile(n, vmem_budget):
    """Pick the node-row tile.

    Bigger tiles amortize per-grid-step overhead (measured tiled streams:
    256 -> ~63% of HBM roofline, 512 -> ~85%), but cap at ceil(n/2) so v7x's
    two TensorCores both get work on the 'parallel' row axis, and shrink if
    the multi-buffered bf16 A window would not comfortably fit in VMEM.
    """
    cap = 512 if vmem_budget >= 96 * (1 << 20) else 256
    half = _round_up(max((n + 1) // 2, ROW_ALIGN), ROW_ALIGN)
    tile = max(min(cap, half, _round_up(n, ROW_ALIGN)), ROW_ALIGN)
    while tile > ROW_ALIGN:
        n_pad = _round_up(n, tile)
        if 3 * tile * n_pad * 2 <= vmem_budget // 2:   # 3-deep bf16 A window
            break
        tile = _round_up(tile // 2, ROW_ALIGN)
    return tile


# ----------------------------------------------------------------------------
# Fused ARMAConv layer kernel (one grid step = one row tile of nodes)
# ----------------------------------------------------------------------------
def _arma_layer_kernel(a_ref, x_ref, wt_ref, wr_ref, b_ref, o_ref, *,
                       num_stacks, fout_pad, num_valid_out, row_tile,
                       activation):
    """
    a_ref  : (row_tile, N_pad)     bf16 row block of normalized adjacency
    x_ref  : (N_pad, Fin_p)        bf16 full node features (VMEM resident)
    wt_ref : (Fin_p, K * Fout_p)   bf16 init_weight W_k, stacks packed on lanes
    wr_ref : (Fin_p, K * Fout_p)   bf16 root_weight V_k, stacks packed on lanes
    b_ref  : (1, K * Fout_p)       f32 bias b_k, stacks packed on lanes
    o_ref  : (row_tile, Fout_p)    mean-over-stacks output (lane-dense)
    """
    i = pl.program_id(0)

    # Dominant matmul: bf16 operands streamed from HBM, f32 MXU accumulation.
    # Propagation hoisted out of the stack loop: (A @ X) @ W_k == A @ (X @ W_k).
    ax = jnp.dot(a_ref[...], x_ref[...], preferred_element_type=jnp.float32)

    # Row tile of X for the root (skip-connection) term.
    r0 = pl.multiple_of(i * row_tile, row_tile)
    x_tile = x_ref[pl.ds(r0, row_tile), :]                      # (row_tile, Fin_p)

    # All K stacks in one lane-dense matmul pair: (row_tile, K*Fout_p).
    s = jnp.dot(ax.astype(jnp.bfloat16), wt_ref[...],
                preferred_element_type=jnp.float32)
    s = s + jnp.dot(x_tile, wr_ref[...], preferred_element_type=jnp.float32)
    s = jnp.maximum(s + b_ref[...], 0.0)     # ARMAConv-internal ReLU (per stack)

    # Mean over the K stacks: 128-aligned column blocks -> cheap aligned adds.
    acc = s[:, 0:fout_pad]
    for k in range(1, num_stacks):
        acc = acc + s[:, k * fout_pad:(k + 1) * fout_pad]
    out = acc * (1.0 / num_stacks)                              # f32 (row_tile, Fout_p)

    if activation == "relu":
        # Module-level ReLU between layers (dropout is identity in eval mode).
        out = jnp.maximum(out, 0.0)
    elif activation == "log_softmax":
        # Fused numerically stable log-softmax over the first `num_valid_out`
        # real classes; zero-padded lanes are excluded from max and sum.
        col = jax.lax.broadcasted_iota(jnp.int32, out.shape, 1)
        valid = col < num_valid_out
        m = jnp.max(jnp.where(valid, out, -1e30), axis=1, keepdims=True)
        z = out - m
        se = jnp.sum(jnp.where(valid, jnp.exp(z), 0.0), axis=1, keepdims=True)
        out = z - jnp.log(se)

    o_ref[...] = out.astype(o_ref.dtype)


def arma_layer(a_pad, x_pad, w_top, w_root, b_cat, *, num_stacks, fout_pad,
               num_valid_out, row_tile, activation, out_dtype, vmem_limit):
    n_pad, fin_p = x_pad.shape
    kf = w_top.shape[1]
    n_tiles = n_pad // row_tile
    # Deeper buffering on the streamed A block only when there are enough
    # steps for it to matter; grid-invariant operands are single-buffered.
    a_buffers = 3 if n_tiles >= 3 else 2

    kernel = functools.partial(
        _arma_layer_kernel, num_stacks=num_stacks, fout_pad=fout_pad,
        num_valid_out=num_valid_out, row_tile=row_tile, activation=activation)

    return pl.pallas_call(
        kernel,
        out_shape=jax.ShapeDtypeStruct((n_pad, fout_pad), out_dtype),
        grid_spec=pltpu.PrefetchScalarGridSpec(
            num_scalar_prefetch=0,
            grid=(n_tiles,),
            in_specs=[
                # Streamed A row block: the only operand that changes per step.
                pl.BlockSpec((row_tile, n_pad), lambda i: (i, 0),
                             pipeline_mode=pl.Buffered(a_buffers)),
                # Grid-invariant, VMEM-resident operands: single-buffered so
                # they are not duplicated by the default double-buffering.
                pl.BlockSpec((n_pad, fin_p), lambda i: (0, 0),
                             pipeline_mode=pl.Buffered(1)),
                pl.BlockSpec((fin_p, kf), lambda i: (0, 0),
                             pipeline_mode=pl.Buffered(1)),
                pl.BlockSpec((fin_p, kf), lambda i: (0, 0),
                             pipeline_mode=pl.Buffered(1)),
                pl.BlockSpec((1, kf), lambda i: (0, 0),
                             pipeline_mode=pl.Buffered(1)),
            ],
            out_specs=pl.BlockSpec((row_tile, fout_pad), lambda i: (i, 0)),
        ),
        compiler_params=pltpu.CompilerParams(
            dimension_semantics=("parallel",),   # row tiles shard across TCs
            vmem_limit_bytes=vmem_limit),
    )(a_pad, x_pad, w_top, w_root, b_cat)


# ----------------------------------------------------------------------------
# Plain-JAX glue: gcn_norm dense adjacency, parameter init/packing, layer loop
# ----------------------------------------------------------------------------
def build_norm_adj(edge_index, edge_weight, num_nodes):
    """PyG gcn_norm (add_self_loops=False) densified: A_hat[col, row] = norm."""
    row, col = edge_index[0], edge_index[1]
    deg = jnp.zeros((num_nodes,), jnp.float32).at[col].add(edge_weight)
    dinv = jnp.where(deg > 0, jax.lax.rsqrt(deg), 0.0)
    norm = dinv[row] * edge_weight * dinv[col]
    a = jnp.zeros((num_nodes, num_nodes), jnp.float32).at[col, row].add(norm)
    return a


def init_arma_params(key, num_features, num_stacks):
    """Per layer: (init_weight[K,Fin,Fout], root_weight[K,Fin,Fout], bias[K,1,Fout])."""
    params = []
    for fin, fout in zip(num_features[:-1], num_features[1:]):
        key, k1, k2 = jax.random.split(key, 3)
        scale = (6.0 / (fin + fout)) ** 0.5  # glorot-uniform style, deterministic
        w = jax.random.uniform(k1, (num_stacks, fin, fout), jnp.float32, -scale, scale)
        v = jax.random.uniform(k2, (num_stacks, fin, fout), jnp.float32, -scale, scale)
        b = jnp.zeros((num_stacks, 1, fout), jnp.float32)  # PyG zeros bias init
        params.append((w, v, b))
    return params


def pack_layer_params(w, v, b, fin_pad, fout_pad):
    """Pack per-stack (K, Fin, Fout) weights into lane-dense 2-D slabs.

    Stack k occupies the 128-aligned column block [k*fout_pad, k*fout_pad+Fout);
    padded rows/columns are zero so they contribute nothing.
    """
    k, fin, fout = w.shape
    w_top = jnp.zeros((fin_pad, k * fout_pad), jnp.float32)
    w_root = jnp.zeros((fin_pad, k * fout_pad), jnp.float32)
    b_cat = jnp.zeros((1, k * fout_pad), jnp.float32)
    for kk in range(k):
        c0 = kk * fout_pad
        w_top = w_top.at[:fin, c0:c0 + fout].set(w[kk])
        w_root = w_root.at[:fin, c0:c0 + fout].set(v[kk])
        b_cat = b_cat.at[:, c0:c0 + fout].set(b[kk])
    return w_top, w_root, b_cat


def prepare_arma(x, a_hat, params):
    """One-time padding/packing (hoisted out of the per-call forward path)."""
    n, f_in = x.shape
    vmem_budget = _vmem_budget_bytes()
    row_tile = _choose_row_tile(n, vmem_budget)
    n_pad = _round_up(n, row_tile)
    fin_p = _round_up(f_in, LANE)

    # bf16 streaming operands (f32 MXU accumulation happens in-kernel).
    a_pad = jnp.zeros((n_pad, n_pad), jnp.bfloat16).at[:n, :n].set(
        a_hat.astype(jnp.bfloat16))
    x_pad = jnp.zeros((n_pad, fin_p), jnp.bfloat16).at[:n, :f_in].set(
        x.astype(jnp.bfloat16))

    layers = []
    cur_fin_p = fin_p
    for (w, v, b) in params:
        k, _, fout = w.shape
        fout_p = _round_up(fout, LANE)
        w_top, w_root, b_cat = pack_layer_params(w, v, b, cur_fin_p, fout_p)
        layers.append(dict(
            w_top=w_top.astype(jnp.bfloat16),
            w_root=w_root.astype(jnp.bfloat16),
            b_cat=b_cat,                        # bias stays f32 (added post-MXU)
            num_stacks=k, fout=fout, fout_p=fout_p))
        cur_fin_p = fout_p

    return dict(a_pad=a_pad, x_pad=x_pad, layers=layers, n=n,
                row_tile=row_tile, vmem_limit=vmem_budget)


def arma_forward(prepared):
    """Full ARMA module forward (eval mode): ARMAConv -> ReLU -> ... -> log_softmax."""
    a_pad = prepared["a_pad"]
    xp = prepared["x_pad"]
    layers = prepared["layers"]
    n_layers = len(layers)
    for li, lyr in enumerate(layers):
        last = li == n_layers - 1
        xp = arma_layer(
            a_pad, xp, lyr["w_top"], lyr["w_root"], lyr["b_cat"],
            num_stacks=lyr["num_stacks"], fout_pad=lyr["fout_p"],
            num_valid_out=lyr["fout"], row_tile=prepared["row_tile"],
            activation="log_softmax" if last else "relu",
            out_dtype=jnp.float32 if last else jnp.bfloat16,
            vmem_limit=prepared["vmem_limit"])
    return xp[:prepared["n"], :layers[-1]["fout"]]


def arma_reference(x, a_hat, params):
    """Pure-JAX f32 reference of the same forward (eval mode)."""
    h = x
    n_layers = len(params)
    for li, (w, v, b) in enumerate(params):
        ax = a_hat @ h
        stacks = [jnp.maximum(ax @ w[k] + h @ v[k] + b[k], 0.0)
                  for k in range(w.shape[0])]
        h = jnp.mean(jnp.stack(stacks, axis=0), axis=0)
        if li < n_layers - 1:
            h = jnp.maximum(h, 0.0)
    return jax.nn.log_softmax(h, axis=1)


# ----------------------------------------------------------------------------
if __name__ == "__main__":
    N_NODES = 16       # number of graph nodes
    F_IN = 8           # input node-feature dim
    HIDDEN = [32]      # hidden dims
    N_CLASSES = 4      # dataset.num_classes
    STACKS = 2         # ARMA stacks K

    key = jax.random.PRNGKey(0)
    kx, kw, ke = jax.random.split(key, 3)

    # Node features
    x = jax.random.normal(kx, (N_NODES, F_IN), dtype=jnp.float32)

    # Bidirectional ring graph with deterministic positive edge weights
    src = jnp.arange(N_NODES, dtype=jnp.int32)
    dst = (src + 1) % N_NODES
    edge_index = jnp.stack([jnp.concatenate([src, dst]),
                            jnp.concatenate([dst, src])], axis=0)
    edge_attr = jax.random.uniform(ke, (edge_index.shape[1],), jnp.float32,
                                   minval=0.5, maxval=1.5)

    a_hat = build_norm_adj(edge_index, edge_attr, N_NODES)
    params = init_arma_params(kw, [F_IN] + HIDDEN + [N_CLASSES], STACKS)

    prepared = prepare_arma(x, a_hat, params)   # one-time pad/pack (hoisted)
    out = arma_forward(prepared)
    out = jax.block_until_ready(out)

    assert out.shape == (N_NODES, N_CLASSES)
    assert bool(jnp.all(jnp.isfinite(out)))
    # rows of log_softmax must exp-sum to 1
    assert bool(jnp.allclose(jnp.sum(jnp.exp(out), axis=1), 1.0, atol=1e-5))
    # matches the f32 pure-JAX reference within bf16-streaming tolerance
    ref = arma_reference(x, a_hat, params)
    assert float(jnp.max(jnp.abs(out - ref))) < 0.25
    print("KERNEL_OK")
</pallas_src>

<mosaic_0001>
module attributes {stable_mosaic.version = 11 : i64} {
  func.func @_arma_layer_kernel(%arg0: i32, %arg1: memref<16x16xbf16, #tpu.memory_space<vmem>>, %arg2: memref<16x128xbf16, #tpu.memory_space<vmem>>, %arg3: memref<128x256xbf16, #tpu.memory_space<vmem>>, %arg4: memref<128x256xbf16, #tpu.memory_space<vmem>>, %arg5: memref<1x256xf32, #tpu.memory_space<vmem>>, %arg6: memref<16x128xbf16, #tpu.memory_space<vmem>>) attributes {dimension_semantics = [#tpu.dimension_semantics<parallel>], iteration_bounds = array<i64: 1>, scalar_prefetch = 0 : i64, scratch_operands = 0 : i64, tpu.core_type = #tpu.core_type<tc>, window_params = [{pipeline_mode = #tpu.pipeline_mode<double_buffered>, transform_indices = @transform_0, window_bounds = array<i64: 16, 16>}, {pipeline_mode = #tpu.pipeline_mode<synchronous>, transform_indices = @transform_1, window_bounds = array<i64: 16, 128>}, {pipeline_mode = #tpu.pipeline_mode<synchronous>, transform_indices = @transform_2, window_bounds = array<i64: 128, 256>}, {pipeline_mode = #tpu.pipeline_mode<synchronous>, transform_indices = @transform_3, window_bounds = array<i64: 128, 256>}, {pipeline_mode = #tpu.pipeline_mode<synchronous>, transform_indices = @transform_4, window_bounds = array<i64: 1, 256>}, {transform_indices = @transform_5, window_bounds = array<i64: 16, 128>}]} {
    %c0 = arith.constant 0 : index
    %c0_0 = arith.constant 0 : index
    %0 = vector.load %arg1[%c0, %c0_0] : memref<16x16xbf16, #tpu.memory_space<vmem>>, vector<16x16xbf16>
    %c0_1 = arith.constant 0 : index
    %c0_2 = arith.constant 0 : index
    %1 = vector.load %arg2[%c0_1, %c0_2] : memref<16x128xbf16, #tpu.memory_space<vmem>>, vector<16x128xbf16>
    %cst = arith.constant dense<0.000000e+00> : vector<16x128xf32>
    %2 = tpu.matmul %0, %1, %cst {dimension_numbers = #tpu.dot_dimension_numbers<[1], [0], [0], [1], [0, 0, 1, 1], [], []>} : vector<16x16xbf16>, vector<16x128xbf16>, vector<16x128xf32> -> vector<16x128xf32>
    %c16_i32 = arith.constant 16 : i32
    %3 = arith.muli %arg0, %c16_i32 : i32
    %4 = tpu.assume_multiple %3, 16 : i32
    %5 = arith.index_cast %4 : i32 to index
    %c0_3 = arith.constant 0 : index
    %6 = vector.load %arg2[%5, %c0_3] : memref<16x128xbf16, #tpu.memory_space<vmem>>, vector<16x128xbf16>
    %7 = arith.truncf %2 : vector<16x128xf32> to vector<16x128xbf16>
    %c0_4 = arith.constant 0 : index
    %c0_5 = arith.constant 0 : index
    %8 = vector.load %arg3[%c0_4, %c0_5] : memref<128x256xbf16, #tpu.memory_space<vmem>>, vector<128x256xbf16>
    %cst_6 = arith.constant dense<0.000000e+00> : vector<16x256xf32>
    %9 = tpu.matmul %7, %8, %cst_6 {dimension_numbers = #tpu.dot_dimension_numbers<[1], [0], [0], [1], [0, 0, 1, 1], [], []>} : vector<16x128xbf16>, vector<128x256xbf16>, vector<16x256xf32> -> vector<16x256xf32>
    %c0_7 = arith.constant 0 : index
    %c0_8 = arith.constant 0 : index
    %10 = vector.load %arg4[%c0_7, %c0_8] : memref<128x256xbf16, #tpu.memory_space<vmem>>, vector<128x256xbf16>
    %cst_9 = arith.constant dense<0.000000e+00> : vector<16x256xf32>
    %11 = tpu.matmul %6, %10, %cst_9 {dimension_numbers = #tpu.dot_dimension_numbers<[1], [0], [0], [1], [0, 0, 1, 1], [], []>} : vector<16x128xbf16>, vector<128x256xbf16>, vector<16x256xf32> -> vector<16x256xf32>
    %12 = arith.addf %9, %11 : vector<16x256xf32>
    %c0_10 = arith.constant 0 : index
    %c0_11 = arith.constant 0 : index
    %13 = vector.load %arg5[%c0_10, %c0_11] : memref<1x256xf32, #tpu.memory_space<vmem>>, vector<1x256xf32>
    %14 = vector.broadcast %13 : vector<1x256xf32> to vector<16x256xf32>
    %15 = arith.addf %12, %14 : vector<16x256xf32>
    %cst_12 = arith.constant 0.000000e+00 : f32
    %16 = vector.broadcast %cst_12 : f32 to vector<16x256xf32>
    %17 = arith.maximumf %15, %16 : vector<16x256xf32>
    %18 = vector.extract_strided_slice %17 {offsets = [0, 0], sizes = [16, 128], strides = [1, 1]} : vector<16x256xf32> to vector<16x128xf32>
    %19 = vector.extract_strided_slice %17 {offsets = [0, 128], sizes = [16, 128], strides = [1, 1]} : vector<16x256xf32> to vector<16x128xf32>
    %20 = arith.addf %18, %19 : vector<16x128xf32>
    %cst_13 = arith.constant 5.000000e-01 : f32
    %21 = vector.broadcast %cst_13 : f32 to vector<16x128xf32>
    %22 = arith.mulf %20, %21 : vector<16x128xf32>
    %cst_14 = arith.constant 0.000000e+00 : f32
    %23 = vector.broadcast %cst_14 : f32 to vector<16x128xf32>
    %24 = arith.maximumf %22, %23 : vector<16x128xf32>
    %25 = arith.truncf %24 : vector<16x128xf32> to vector<16x128xbf16>
    %c0_15 = arith.constant 0 : index
    %c0_16 = arith.constant 0 : index
    %26 = vector.load %arg6[%c0_15, %c0_16] : memref<16x128xbf16, #tpu.memory_space<vmem>>, vector<16x128xbf16>
    tpu.vector_store %arg6[%c0_15, %c0_16], %25 {strides = array<i32>} : memref<16x128xbf16, #tpu.memory_space<vmem>>, vector<16x128xbf16>,
    return
  }
  func.func @transform_0(%arg0: i32) -> (i32, i32) {
    %c0_i32 = arith.constant 0 : i32
    %c0_i32_0 = arith.constant 0 : i32
    return %arg0, %c0_i32 : i32, i32
  }
  func.func @transform_1(%arg0: i32) -> (i32, i32) {
    %c0_i32 = arith.constant 0 : i32
    %c0_i32_0 = arith.constant 0 : i32
    %c0_i32_1 = arith.constant 0 : i32
    return %c0_i32, %c0_i32_0 : i32, i32
  }
  func.func @transform_2(%arg0: i32) -> (i32, i32) {
    %c0_i32 = arith.constant 0 : i32
    %c0_i32_0 = arith.constant 0 : i32
    %c0_i32_1 = arith.constant 0 : i32
    return %c0_i32, %c0_i32_0 : i32, i32
  }
  func.func @transform_3(%arg0: i32) -> (i32, i32) {
    %c0_i32 = arith.constant 0 : i32
    %c0_i32_0 = arith.constant 0 : i32
    %c0_i32_1 = arith.constant 0 : i32
    return %c0_i32, %c0_i32_0 : i32, i32
  }
  func.func @transform_4(%arg0: i32) -> (i32, i32) {
    %c0_i32 = arith.constant 0 : i32
    %c0_i32_0 = arith.constant 0 : i32
    %c0_i32_1 = arith.constant 0 : i32
    return %c0_i32, %c0_i32_0 : i32, i32
  }
  func.func @transform_5(%arg0: i32) -> (i32, i32) {
    %c0_i32 = arith.constant 0 : i32
    %c0_i32_0 = arith.constant 0 : i32
    return %arg0, %c0_i32 : i32, i32
  }
}

</mosaic_0001>

<bundles_post_ra>
// kernel: tpu_custom_call.1
= control target key start
LH: loop header
LB: loop body
LE: loop exit
PB: predicated region body
PF: predicated region fallthrough
CT: control target
= control target key end

     0   :  { %10 = vsyncpa [#allocation3], 0  ;;  %s811_s0 = inlined_call_operand.hbm [shape: bf16[16,16], index: 0, kind: input, shape index: {}]   ;;  %s812_s1 = inlined_call_operand.hbm [shape: bf16[16,128], index: 1, kind: input, shape index: {}]   ;;  %s813_s2 = inlined_call_operand.hbm [shape: bf16[128,256], index: 2, kind: input, shape index: {}]   ;;  %s814_s3 = inlined_call_operand.hbm [shape: bf16[128,256], index: 3, kind: input, shape index: {}]   ;;  %s815_s4 = inlined_call_operand.vmem [shape: f32[1,256], index: 4, kind: input, shape index: {}]   ;;  %s816_s5 = inlined_call_operand.hbm [shape: bf16[16,128], index: 5, kind: output, shape index: {}]  }
   0x1   :  { %11 = vsyncpa [#allocation6], 0 }
   0x2   :  { %12 = vsyncpa [#allocation9], 0 }
   0x3   :  { %13 = vsyncpa [#allocation4], 0  ;;  %s31_s20 = sshll.u32 %s812_s1, 4  ;;  %s745_s21 = smov [#allocation5]   ;;  %s32_s20 = int_to_ptr.hbm [resolvable:$true] %s31_s20 }
   0x4   :  { %s33_s22 = sshll.u32 %s745_s21, 4  ;;  %s18_s25 = sshll.u32 %s811_s0, 4  ;;  %s34_s22 = int_to_ptr.vmem [resolvable:$true] %s33_s22  ;;  %s19_s25 = int_to_ptr.hbm [resolvable:$true] %s18_s25 }
   0x5   :  { %s746_s26 = smov 64   ;;  %s747_s27 = smov 4  }
   0x6   :  { %39 = dma.hbm_to_vmem [thread:$0]  %s32_s20, 128, %s34_s22, [#allocation6], %s746_s26, %s746_s26, %s747_s27  }
   0x7   :  { %s748_s28 = smov [#allocation2]   ;;  %s44_s1 = sshll.u32 %s813_s2, 4  ;;  %s45_s1 = int_to_ptr.hbm [resolvable:$true] %s44_s1 }
   0x8   :  { %s20_s29 = sshll.u32 %s748_s28, 4  ;;  %s749_s0 = smov [#allocation7]   ;;  %s21_s29 = int_to_ptr.vmem [resolvable:$true] %s20_s29 }
   0x9   :  { %26 = dma.hbm_to_vmem [thread:$0]  %s19_s25, 128, %s21_s29, [#allocation3], %s746_s26, %s746_s26, %s747_s27  }
   0xa   :  { %s46_s7 = sshll.u32 %s749_s0, 4  ;;  %s57_s10 = sshll.u32 %s814_s3, 4  ;;  %s47_s7 = int_to_ptr.vmem [resolvable:$true] %s46_s7  ;;  %s58_s10 = int_to_ptr.hbm [resolvable:$true] %s57_s10 }
   0xb   :  { %s750_s11 = smov 128   ;;  %s751_s12 = smov 8  }
   0xc   :  { %52 = dma.hbm_to_vmem [thread:$0]  %s45_s1, 2048, %s47_s7, [#allocation6], %s750_s11, %s750_s11, %s751_s12  }
   0xd   :  { %s752_s13 = smov [#allocation8]  }
   0xe   :  { %s59_s14 = sshll.u32 %s752_s13, 4  ;;  %s60_s14 = int_to_ptr.vmem [resolvable:$true] %s59_s14 }
   0xf   :  { %65 = dma.hbm_to_vmem [thread:$0]  %s58_s10, 2048, %s60_s14, [#allocation9], %s750_s11, %s750_s11, %s751_s12  }
  0x10   :  { %737 = dma.done.wait [#allocation3], 128  }
  0x11   :  { %738 = vsyncadd [#allocation3], 4294967168 }
  0x12   :  { %739 = dma.done.wait [#allocation6], 2176  }
  0x13   :  { %740 = vsyncadd [#allocation6], 4294965120 }
  0x14   :  { %741 = dma.done.wait [#allocation9], 2048  }
  0x15   :  { %742 = vsyncadd [#allocation9], 4294965248  ;;  %v569_v0 = vld [vmem:[#allocation5] sm:$0xff]  ;;  %v568_v1 = vld [vmem:[#allocation2] sm:$0xff]  ;;  %vm100_vm0 = vcmask 130048   ;;  %s410_s18 = sshll.u32 %s816_s5, 4  ;;  %s411_s18 = int_to_ptr.hbm [resolvable:$true] %s410_s18 }
  0x16   :  { %v601_v2 = vld [vmem:[#allocation8 + $0x74] sm:$0xf]  ;;  %v500_v3 = vld [vmem:[#allocation8 + $0x78] sm:$0xf0]  ;;  %v599_v4 = vld [vmem:[#allocation8 + $0x64] sm:$0xf]  ;;  %111 = vmatpush.bf16.msra.mxu0 %v569_v0 }
  0x17   :  { %v492_v5 = vld [vmem:[#allocation8 + $0x68] sm:$0xf0]  ;;  %v503_v6 = vor.u32 %v601_v2, %v500_v3  ;;  %v498_v7 = vld [vmem:[#allocation8 + $0x70] sm:$0xf]  ;;  %v602_v8 = vld [vmem:[#allocation8 + $0x74] sm:$0xf0] }
  0x18   :  { %v499_v9 = vor.u32 %v602_v8, %v498_v7  ;;  %v562_v10 = vld [vmem:[#allocation7 + $0x70] sm:$0xf]  ;;  %v586_v11 = vld [vmem:[#allocation7 + $0x74] sm:$0xf0]  ;;  %v495_v12 = vor.u32 %v599_v4, %v492_v5  ;;  %v585_v14 = vld [vmem:[#allocation7 + $0x74] sm:$0xf] }
  0x19   :  { %258 = vmatpush.bf16.msra.mxu2 %v503_v6  ;;  %v563_v13 = vor.u32 %v586_v11, %v562_v10  ;;  %v564_v15 = vld [vmem:[#allocation7 + $0x78] sm:$0xf0]  ;;  %v490_v16 = vld [vmem:[#allocation8 + $0x60] sm:$0xf]  ;;  %435 = vmatmul.msk.bf16.vlgmr.msra.gmra.mxu0 %vm100_vm0, %v568_v1  ;;  %v597_v17 = vld [vmem:[#allocation8 + $0x54] sm:$0xf] }
  0x1a   :  { %244 = vmatpush.bf16.msra.mxu1 %v499_v9  ;;  %v484_v18 = vld [vmem:[#allocation8 + $0x58] sm:$0xf0]  ;;  %v567_v19 = vor.u32 %v585_v14, %v564_v15  ;;  %v600_v20 = vld [vmem:[#allocation8 + $0x64] sm:$0xf0]  ;;  %v554_v22 = vld [vmem:[#allocation7 + $0x60] sm:$0xf] }
  0x1b   :  { %352 = vmatpush.bf16.msra.mxu3 %v563_v13  ;;  %v491_v21 = vor.u32 %v600_v20, %v490_v16  ;;  %v584_v23 = vld [vmem:[#allocation7 + $0x64] sm:$0xf0]  ;;  %v583_v24 = vld [vmem:[#allocation7 + $0x64] sm:$0xf]  ;;  %v556_v26 = vld [vmem:[#allocation7 + $0x68] sm:$0xf0]  ;;  %v487_v29 = vor.u32 %v597_v17, %v484_v18 }
  0x1c   :  { %366 = vmatpush.bf16.msrb.mxu0 %v567_v19  ;;  %v555_v25 = vor.u32 %v584_v23, %v554_v22  ;;  %v482_v27 = vld [vmem:[#allocation8 + $0x50] sm:$0xf]  ;;  %v598_v28 = vld [vmem:[#allocation8 + $0x54] sm:$0xf0]  ;;  %v595_v30 = vld [vmem:[#allocation8 + $0x44] sm:$0xf]  ;;  %v559_v32 = vor.u32 %v583_v24, %v556_v26 }
  0x1d   :  { %259 = vmatpush.bf16.msra.mxu2 %v495_v12  ;;  %v476_v31 = vld [vmem:[#allocation8 + $0x48] sm:$0xf0]  ;;  %v546_v33 = vld [vmem:[#allocation7 + $0x50] sm:$0xf]  ;;  %v483_v34 = vor.u32 %v598_v28, %v482_v27  ;;  %v582_v35 = vld [vmem:[#allocation7 + $0x54] sm:$0xf0] }
  0x1e   :  { %245 = vmatpush.bf16.msra.mxu1 %v491_v21  ;;  %v581_v36 = vld [vmem:[#allocation7 + $0x54] sm:$0xf]  ;;  %v548_v37 = vld [vmem:[#allocation7 + $0x58] sm:$0xf0]  ;;  %v547_v38 = vor.u32 %v582_v35, %v546_v33  ;;  %v474_v39 = vld [vmem:[#allocation8 + $0x40] sm:$0xf]  ;;  %v479_v44 = vor.u32 %v595_v30, %v476_v31 }
  0x1f   :  { %353 = vmatpush.bf16.msra.mxu3 %v555_v25  ;;  %v596_v40 = vld [vmem:[#allocation8 + $0x44] sm:$0xf0]  ;;  %v551_v41 = vor.u32 %v581_v36, %v548_v37  ;;  %v538_v42 = vld [vmem:[#allocation7 + $0x40] sm:$0xf]  ;;  %v579_v45 = vld [vmem:[#allocation7 + $0x44] sm:$0xf] }
  0x20   :  { %367 = vmatpush.bf16.msrb.mxu0 %v559_v32  ;;  %v580_v43 = vld [vmem:[#allocation7 + $0x44] sm:$0xf0]  ;;  %v540_v46 = vld [vmem:[#allocation7 + $0x48] sm:$0xf0]  ;;  %v593_v47 = vld [vmem:[#allocation8 + $0x34] sm:$0xf]  ;;  %v475_v49 = vor.u32 %v596_v40, %v474_v39 }
  0x21   :  { %260 = vmatpush.bf16.msra.mxu2 %v487_v29  ;;  %v468_v48 = vld [vmem:[#allocation8 + $0x38] sm:$0xf0]  ;;  %v539_v50 = vor.u32 %v580_v43, %v538_v42  ;;  %v466_v51 = vld [vmem:[#allocation8 + $0x30] sm:$0xf]  ;;  %v594_v52 = vld [vmem:[#allocation8 + $0x34] sm:$0xf0]  ;;  %v543_v53 = vor.u32 %v579_v45, %v540_v46 }
  0x22   :  { %246 = vmatpush.bf16.msra.mxu1 %v483_v34  ;;  %v530_v54 = vld [vmem:[#allocation7 + $0x30] sm:$0xf]  ;;  %v578_v55 = vld [vmem:[#allocation7 + $0x34] sm:$0xf0]  ;;  %v471_v56 = vor.u32 %v593_v47, %v468_v48  ;;  %v577_v57 = vld [vmem:[#allocation7 + $0x34] sm:$0xf]  ;;  %v467_v61 = vor.u32 %v594_v52, %v466_v51 }
  0x23   :  { %354 = vmatpush.bf16.msra.mxu3 %v547_v38  ;;  %v532_v58 = vld [vmem:[#allocation7 + $0x38] sm:$0xf0]  ;;  %v591_v59 = vld [vmem:[#allocation8 + $0x24] sm:$0xf]  ;;  %v460_v60 = vld [vmem:[#allocation8 + $0x28] sm:$0xf0]  ;;  %v531_v62 = vor.u32 %v578_v55, %v530_v54 }
  0x24   :  { %368 = vmatpush.bf16.msrb.mxu0 %v551_v41  ;;  %v458_v63 = vld [vmem:[#allocation8 + $0x20] sm:$0xf]  ;;  %v592_v0 = vld [vmem:[#allocation8 + $0x24] sm:$0xf0]  ;;  %v535_v1 = vor.u32 %v577_v57, %v532_v58  ;;  %v463_v2 = vor.u32 %v591_v59, %v460_v60  ;;  %v589_v3 = vld [vmem:[#allocation8 + $0x14] sm:$0xf] }
  0x25   :  { %261 = vmatpush.bf16.msra.mxu2 %v479_v44  ;;  %v452_v4 = vld [vmem:[#allocation8 + $0x18] sm:$0xf0]  ;;  %v459_v5 = vor.u32 %v592_v0, %v458_v63  ;;  %v587_v7 = vld [vmem:[#allocation8 + $0x4] sm:$0xf]  ;;  %v444_v8 = vld [vmem:[#allocation8 + $0x8] sm:$0xf0] }
  0x26   :  { %247 = vmatpush.bf16.msra.mxu1 %v475_v49  ;;  %v455_v6 = vor.u32 %v589_v3, %v452_v4  ;;  %v522_v9 = vld [vmem:[#allocation7 + $0x20] sm:$0xf]  ;;  %v447_v10 = vor.u32 %v587_v7, %v444_v8  ;;  %v576_v11 = vld [vmem:[#allocation7 + $0x24] sm:$0xf0]  ;;  %v575_v12 = vld [vmem:[#allocation7 + $0x24] sm:$0xf] }
  0x27   :  { %355 = vmatpush.bf16.msra.mxu3 %v539_v50  ;;  %v524_v13 = vld [vmem:[#allocation7 + $0x28] sm:$0xf0]  ;;  %v523_v14 = vor.u32 %v576_v11, %v522_v9  ;;  %v450_v16 = vld [vmem:[#allocation8 + $0x10] sm:$0xf]  ;;  %v590_v17 = vld [vmem:[#allocation8 + $0x14] sm:$0xf0] }
  0x28   :  { %369 = vmatpush.bf16.msrb.mxu0 %v543_v53  ;;  %v527_v15 = vor.u32 %v575_v12, %v524_v13  ;;  %v451_v18 = vor.u32 %v590_v17, %v450_v16  ;;  %v570_v19 = vld [vmem:[#allocation5] sm:$0xff]  ;;  %v514_v20 = vld [vmem:[#allocation7 + $0x10] sm:$0xf]  ;;  %v573_v23 = vld [vmem:[#allocation7 + $0x14] sm:$0xf] }
  0x29   :  { %262 = vmatpush.bf16.msra.mxu2 %v471_v56  ;;  %v574_v21 = vld [vmem:[#allocation7 + $0x14] sm:$0xf0]  ;;  %v516_v24 = vld [vmem:[#allocation7 + $0x18] sm:$0xf0]  ;;  %v442_v25 = vld [vmem:[#allocation8] sm:$0xf] }
  0x2a   :  { %248 = vmatpush.bf16.msra.mxu1 %v467_v61  ;;  %v515_v22 = vor.u32 %v574_v21, %v514_v20  ;;  %v519_v26 = vor.u32 %v573_v23, %v516_v24  ;;  %v588_v27 = vld [vmem:[#allocation8 + $0x4] sm:$0xf0]  ;;  %v506_v29 = vld [vmem:[#allocation7] sm:$0xf]  ;;  %v571_v31 = vld [vmem:[#allocation7 + $0x4] sm:$0xf] }
  0x2b   :  { %356 = vmatpush.bf16.msra.mxu3 %v531_v62  ;;  %v443_v28 = vor.u32 %v588_v27, %v442_v25  ;;  %v572_v30 = vld [vmem:[#allocation7 + $0x4] sm:$0xf0]  ;;  %v508_v33 = vld [vmem:[#allocation7 + $0x8] sm:$0xf0]  ;;  %v380_v41 = vld [vmem:[%s815_s4] sm:$0x3] }
  0x2c   :  { %370 = vmatpush.bf16.msrb.mxu0 %v535_v1  ;;  %v507_v32 = vor.u32 %v572_v30, %v506_v29  ;;  %v511_v34 = vor.u32 %v571_v31, %v508_v33  ;;  %v382_v42 = vperm.slane %v380_v41, 0  ;;  %v383_v45 = vperm.slane %v380_v41, 1  ;;  %s753_s4 = smov [#allocation10]  }
  0x2d   :  { %263 = vmatpush.bf16.msra.mxu2 %v463_v2  ;;  %s408_s15 = sshll.u32 %s753_s4, 4  ;;  %s409_s15 = int_to_ptr.vmem [resolvable:$true] %s408_s15 }
  0x2e   :  { %249 = vmatpush.bf16.msra.mxu1 %v459_v5 }
  0x2f   :  { %357 = vmatpush.bf16.msra.mxu3 %v523_v14 }
  0x30   :  { %371 = vmatpush.bf16.msrb.mxu0 %v527_v15 }
  0x31   :  { %264 = vmatpush.bf16.msra.mxu2 %v455_v6 }
  0x32   :  { %250 = vmatpush.bf16.msra.mxu1 %v451_v18 }
  0x33   :  { %358 = vmatpush.bf16.msra.mxu3 %v515_v22 }
  0x34   :  { %372 = vmatpush.bf16.msrb.mxu0 %v519_v26 }
  0x35   :  { %265 = vmatpush.bf16.msra.mxu2 %v447_v10 }
  0x36   :  { %251 = vmatpush.bf16.msra.mxu1 %v443_v28 }
  0x37   :  { %359 = vmatpush.bf16.msra.mxu3 %v507_v32 }
  0x38   :  { %266 = vmatmul.bf16.vlgmr.msra.gmra.mxu2 %v570_v19  ;;  %373 = vmatpush.bf16.msrb.mxu0 %v511_v34 }
  0x39   :  { %252 = vmatmul.bf16.vlgmr.msra.gmra.mxu1 %v570_v19 }
  0x96   :  { %v113_v35 = vpop.f32.mrf.mxu0 }
  0x9e   :  { %v115_v36 = vpop.f32.mrf.mxu0 }
  0x9f   :  { %v125_v37 = vpack.c.bf16 %v115_v36, %v113_v35 }
  0xa1   :  { %360 = vmatmul.bf16.vlgmr.msra.gmra.mxu3 %v125_v37  ;;  %374 = vmatmul.bf16.vlgmr.msrb.gmra.mxu0 %v125_v37 }
  0xb6   :  { %v253_v40 = vpop.f32.mrf.mxu1 }
  0xbb   :  { %v267_v38 = vpop.f32.mrf.mxu2 }
  0xbe   :  { %v255_v53 = vpop.f32.mrf.mxu1 }
  0xc3   :  { %v269_v49 = vpop.f32.mrf.mxu2 }
 0x11e   :  { %v375_v39 = vpop.f32.mrf.mxu0 }
 0x11f   :  { %v376_v44 = vadd.f32 %v375_v39, %v267_v38 }
 0x121   :  { %v387_v50 = vadd.f32 %v383_v45, %v376_v44 }
 0x123   :  { %v391_v55 = vmax.f32 %v387_v50, 0.0 }
 0x124   :  { %v361_v43 = vpop.f32.mrf.mxu3 }
 0x125   :  { %v362_v46 = vadd.f32 %v361_v43, %v253_v40 }
 0x126   :  { %v377_v47 = vpop.f32.mrf.mxu0 }
 0x127   :  { %v386_v48 = vadd.f32 %v382_v42, %v362_v46  ;;  %v378_v51 = vadd.f32 %v377_v47, %v269_v49 }
 0x129   :  { %v390_v52 = vmax.f32 %v386_v48, 0.0  ;;  %v389_v56 = vadd.f32 %v383_v45, %v378_v51 }
 0x12b   :  { %v394_v58 = vadd.f32 %v391_v55, %v390_v52  ;;  %v393_v60 = vmax.f32 %v389_v56, 0.0 }
 0x12c   :  { %v363_v54 = vpop.f32.mrf.mxu3 }
 0x12d   :  { %v364_v57 = vadd.f32 %v363_v54, %v255_v53  ;;  %v396_v62 = vmul.f32 0.5, %v394_v58 }
 0x12f   :  { %v388_v59 = vadd.f32 %v382_v42, %v364_v57  ;;  %v398_v1 = vmax.f32 %v396_v62, 0.0 }
 0x131   :  { %v392_v61 = vmax.f32 %v388_v59, 0.0 }
 0x133   :  { %v395_v63 = vadd.f32 %v393_v60, %v392_v61 }
 0x135   :  { %v397_v0 = vmul.f32 0.5, %v395_v63 }
 0x137   :  { %v399_v2 = vmax.f32 %v397_v0, 0.0 }
 0x139   :  { %v606_v3 = vpack.c.bf16 %v399_v2, %v398_v1 }
 0x13b   :  { %607 = vst [vmem:[#allocation10] sm:$0xff] %v606_v3  }
 0x13c   :  { %416 = dma.vmem_to_hbm [thread:$0]  %s409_s15, 128, %s411_s18, [#allocation4], %s746_s26, %s746_s26, %s747_s27  }
 0x13d   :  { %743 = dma.done.wait [#allocation4], 128  }
 0x13e   :  { %744 = vsyncadd [#allocation4], 4294967168 }
 0x13f   :  { %421 = vsyncpa [#allocation3], 1 }
 0x140   :  { %422 = vsyncpa [#allocation6], 1 }
 0x141   :  { %423 = vsyncpa [#allocation9], 1 }
 0x142   :  { %424 = vsyncpa [#allocation4], 1 }

</bundles_post_ra>
